<compile_context>
chip_gen: v6e
topology: v6e:2x2x1
jax: 0.10.0
libtpu: 0.0.40
codegen_flags: <defaults>
</compile_context>

<pallas_src>
import functools

import jax
import jax.numpy as jnp
from jax.experimental import pallas as pl
from jax.experimental.pallas import tpu as pltpu


def _t2c_kernel(rb, up, W, x_ref, w_ref, b_ref, r_ref, o_ref):
    """Fused 1x1-conv + folded-BN + ReLU + nearest upsample for one row-block."""
    xb = x_ref[0]                                                       # (rb*W, C)
    y = jnp.dot(xb, w_ref[...], preferred_element_type=jnp.float32)     # conv
    y = jnp.maximum(y + b_ref[...], 0.0)                                # +bias/BN, ReLU
    # Precomputed 0/1 repeat matrix realizes the 2-D nearest upsample on the MXU.
    y_up = jnp.dot(r_ref[...], y, preferred_element_type=jnp.float32)   # (rb*up*W*up, Cout)
    wup = W * up
    for r in range(rb * up):                                            # static unroll
        o_ref[0, r] = y_up[r * wup:(r + 1) * wup, :].astype(o_ref.dtype)


def elastic_trans2conv(x, conv_w, conv_b, bn_gamma, bn_beta, bn_mean, bn_var,
                       H, W, up_stride, eps=1e-5, row_block=None):
    """Pallas implementation of Elastic_trans2conv.forward (eval-mode BN).

    x:       (B, 1 + H*W, C) float32 tokens
    conv_w:  (Cout, C)  1x1-conv weight (kernel_size=1 flattened)
    conv_b:  (Cout,)    conv bias
    bn_*:    (Cout,)    BatchNorm gamma/beta/running_mean/running_var
    Returns  (B, Cout, H*up_stride, W*up_stride) float32 (NCHW, like PyTorch).
    """
    B, N, C = x.shape
    Cout = conv_w.shape[0]
    up = int(up_stride)
    assert N == H * W + 1, "expected class token + H*W patch tokens"

    # ---- trace-time precompute (nothing data-dependent left for the kernel) ----
    scale = bn_gamma / jnp.sqrt(bn_var + eps)                            # (Cout,)
    w_eff = (conv_w.reshape(Cout, C) * scale[:, None]).T                 # (C, Cout)
    b_eff = ((conv_b - bn_mean) * scale + bn_beta).reshape(1, Cout)      # (1, Cout)
    x_sp = x[:, 1:, :]                                                   # drop class token

    # Row-block: largest divisor of H keeping the upsampled tile modest (<=128 rows).
    if row_block is None:
        cap = max(1, 128 // (up * up * W))
        row_block = 1
        for cand in range(min(H, cap), 0, -1):
            if H % cand == 0:
                row_block = cand
                break
    rb = int(row_block)
    assert H % rb == 0

    # Precomputed 2-D nearest-neighbour upsample matrix for one row-block.
    wup = W * up
    mo, mi = rb * up * wup, rb * W
    o_idx = jnp.arange(mo)
    src = (o_idx // wup // up) * W + (o_idx % wup) // up                 # (mo,)
    R = (src[:, None] == jnp.arange(mi)[None, :]).astype(x.dtype)        # (mo, mi)

    grid = (B, H // rb)
    out_nhwc = pl.pallas_call(
        functools.partial(_t2c_kernel, rb, up, W),
        out_shape=jax.ShapeDtypeStruct((B, H * up, W * up, Cout), x.dtype),
        grid=grid,
        in_specs=[
            pl.BlockSpec((1, rb * W, C), lambda b, h: (b, h, 0)),
            pl.BlockSpec((C, Cout), lambda b, h: (0, 0)),
            pl.BlockSpec((1, Cout), lambda b, h: (0, 0)),
            pl.BlockSpec((mo, mi), lambda b, h: (0, 0)),
        ],
        out_specs=pl.BlockSpec((1, rb * up, wup, Cout), lambda b, h: (b, h, 0, 0)),
        compiler_params=pltpu.CompilerParams(
            dimension_semantics=("parallel", "parallel")),
    )(x_sp, w_eff, b_eff, R)

    # Final NCHW layout to match the PyTorch module (pure layout op in the wrapper).
    return jnp.transpose(out_nhwc, (0, 3, 1, 2))


def reference(x, conv_w, conv_b, gamma, beta, mean, var, H, W, up, eps=1e-5):
    """Pure-JAX port of the PyTorch forward (for correctness check)."""
    B, N, C = x.shape
    x_r = jnp.transpose(x[:, 1:, :], (0, 2, 1)).reshape(B, C, H, W)
    y = jnp.einsum('oc,bchw->bohw', conv_w, x_r) + conv_b[None, :, None, None]
    y = (y - mean[None, :, None, None]) / jnp.sqrt(var + eps)[None, :, None, None]
    y = y * gamma[None, :, None, None] + beta[None, :, None, None]
    y = jnp.maximum(y, 0.0)
    y = jnp.repeat(jnp.repeat(y, up, axis=2), up, axis=3)                # nearest
    return y


if __name__ == "__main__":
    B, H, W = 2, 8, 8
    C_in, C_out, up = 128, 128, 2
    N = H * W + 1

    key = jax.random.PRNGKey(0)
    k = jax.random.split(key, 7)
    x = jax.random.normal(k[0], (B, N, C_in), jnp.float32)
    conv_w = 0.05 * jax.random.normal(k[1], (C_out, C_in), jnp.float32)
    conv_b = 0.05 * jax.random.normal(k[2], (C_out,), jnp.float32)
    bn_gamma = 1.0 + 0.1 * jax.random.normal(k[3], (C_out,), jnp.float32)
    bn_beta = 0.1 * jax.random.normal(k[4], (C_out,), jnp.float32)
    bn_mean = 0.1 * jax.random.normal(k[5], (C_out,), jnp.float32)
    bn_var = 0.5 + jnp.abs(jax.random.normal(k[6], (C_out,), jnp.float32))

    out = elastic_trans2conv(x, conv_w, conv_b, bn_gamma, bn_beta,
                             bn_mean, bn_var, H, W, up)
    out = jax.block_until_ready(out)

    ref = reference(x, conv_w, conv_b, bn_gamma, bn_beta, bn_mean, bn_var,
                    H, W, up)

    assert out.shape == (B, C_out, H * up, W * up), out.shape
    assert jnp.allclose(out, ref, atol=1e-4, rtol=1e-4), \
        float(jnp.max(jnp.abs(out - ref)))
    print("KERNEL_OK")
</pallas_src>

<mosaic_0001>
module attributes {stable_mosaic.version = 11 : i64} {
  func.func @_t2c_kernel(%arg0: i32, %arg1: i32, %arg2: memref<1x32x128xf32, #tpu.memory_space<vmem>>, %arg3: memref<128x128xf32, #tpu.memory_space<vmem>>, %arg4: memref<1x128xf32, #tpu.memory_space<vmem>>, %arg5: memref<128x32xf32, #tpu.memory_space<vmem>>, %arg6: memref<1x8x16x128xf32, #tpu.memory_space<vmem>>) attributes {dimension_semantics = [#tpu.dimension_semantics<parallel>, #tpu.dimension_semantics<parallel>], iteration_bounds = array<i64: 2, 2>, scalar_prefetch = 0 : i64, scratch_operands = 0 : i64, tpu.core_type = #tpu.core_type<tc>, window_params = [{transform_indices = @transform_0, window_bounds = array<i64: 1, 32, 128>}, {pipeline_mode = #tpu.pipeline_mode<synchronous>, transform_indices = @transform_1, window_bounds = array<i64: 128, 128>}, {pipeline_mode = #tpu.pipeline_mode<synchronous>, transform_indices = @transform_2, window_bounds = array<i64: 1, 128>}, {pipeline_mode = #tpu.pipeline_mode<synchronous>, transform_indices = @transform_3, window_bounds = array<i64: 128, 32>}, {transform_indices = @transform_4, window_bounds = array<i64: 1, 8, 16, 128>}]} {
    %c0 = arith.constant 0 : index
    %c0_0 = arith.constant 0 : index
    %c0_1 = arith.constant 0 : index
    %0 = vector.load %arg2[%c0, %c0_0, %c0_1] : memref<1x32x128xf32, #tpu.memory_space<vmem>>, vector<1x32x128xf32>
    %1 = vector.shape_cast %0 : vector<1x32x128xf32> to vector<32x128xf32>
    %c0_2 = arith.constant 0 : index
    %c0_3 = arith.constant 0 : index
    %2 = vector.load %arg3[%c0_2, %c0_3] : memref<128x128xf32, #tpu.memory_space<vmem>>, vector<128x128xf32>
    %cst = arith.constant dense<0.000000e+00> : vector<32x128xf32>
    %3 = tpu.matmul %1, %2, %cst {dimension_numbers = #tpu.dot_dimension_numbers<[1], [0], [0], [1], [0, 0, 1, 1], [], []>} : vector<32x128xf32>, vector<128x128xf32>, vector<32x128xf32> -> vector<32x128xf32>
    %c0_4 = arith.constant 0 : index
    %c0_5 = arith.constant 0 : index
    %4 = vector.load %arg4[%c0_4, %c0_5] : memref<1x128xf32, #tpu.memory_space<vmem>>, vector<1x128xf32>
    %5 = vector.broadcast %4 : vector<1x128xf32> to vector<32x128xf32>
    %6 = arith.addf %3, %5 : vector<32x128xf32>
    %cst_6 = arith.constant 0.000000e+00 : f32
    %7 = vector.broadcast %cst_6 : f32 to vector<32x128xf32>
    %8 = arith.maximumf %6, %7 : vector<32x128xf32>
    %c0_7 = arith.constant 0 : index
    %c0_8 = arith.constant 0 : index
    %9 = vector.load %arg5[%c0_7, %c0_8] : memref<128x32xf32, #tpu.memory_space<vmem>>, vector<128x32xf32>
    %cst_9 = arith.constant dense<0.000000e+00> : vector<128x128xf32>
    %10 = tpu.matmul %9, %8, %cst_9 {dimension_numbers = #tpu.dot_dimension_numbers<[1], [0], [0], [1], [0, 0, 1, 1], [], []>} : vector<128x32xf32>, vector<32x128xf32>, vector<128x128xf32> -> vector<128x128xf32>
    %11 = vector.extract_strided_slice %10 {offsets = [0, 0], sizes = [16, 128], strides = [1, 1]} : vector<128x128xf32> to vector<16x128xf32>
    %c0_10 = arith.constant 0 : index
    %c0_11 = arith.constant 0 : index
    %c0_12 = arith.constant 0 : index
    %c0_13 = arith.constant 0 : index
    %12 = vector.load %arg6[%c0_10, %c0_11, %c0_12, %c0_13] : memref<1x8x16x128xf32, #tpu.memory_space<vmem>>, vector<1x1x16x128xf32>
    %13 = vector.shape_cast %12 : vector<1x1x16x128xf32> to vector<16x128xf32>
    %14 = vector.shape_cast %11 : vector<16x128xf32> to vector<1x1x16x128xf32>
    tpu.vector_store %arg6[%c0_10, %c0_11, %c0_12, %c0_13], %14 {strides = array<i32>} : memref<1x8x16x128xf32, #tpu.memory_space<vmem>>, vector<1x1x16x128xf32>,
    %15 = vector.extract_strided_slice %10 {offsets = [16, 0], sizes = [16, 128], strides = [1, 1]} : vector<128x128xf32> to vector<16x128xf32>
    %c0_14 = arith.constant 0 : index
    %c1 = arith.constant 1 : index
    %c0_15 = arith.constant 0 : index
    %c0_16 = arith.constant 0 : index
    %16 = vector.load %arg6[%c0_14, %c1, %c0_15, %c0_16] : memref<1x8x16x128xf32, #tpu.memory_space<vmem>>, vector<1x1x16x128xf32>
    %17 = vector.shape_cast %16 : vector<1x1x16x128xf32> to vector<16x128xf32>
    %18 = vector.shape_cast %15 : vector<16x128xf32> to vector<1x1x16x128xf32>
    tpu.vector_store %arg6[%c0_14, %c1, %c0_15, %c0_16], %18 {strides = array<i32>} : memref<1x8x16x128xf32, #tpu.memory_space<vmem>>, vector<1x1x16x128xf32>,
    %19 = vector.extract_strided_slice %10 {offsets = [32, 0], sizes = [16, 128], strides = [1, 1]} : vector<128x128xf32> to vector<16x128xf32>
    %c0_17 = arith.constant 0 : index
    %c2 = arith.constant 2 : index
    %c0_18 = arith.constant 0 : index
    %c0_19 = arith.constant 0 : index
    %20 = vector.load %arg6[%c0_17, %c2, %c0_18, %c0_19] : memref<1x8x16x128xf32, #tpu.memory_space<vmem>>, vector<1x1x16x128xf32>
    %21 = vector.shape_cast %20 : vector<1x1x16x128xf32> to vector<16x128xf32>
    %22 = vector.shape_cast %19 : vector<16x128xf32> to vector<1x1x16x128xf32>
    tpu.vector_store %arg6[%c0_17, %c2, %c0_18, %c0_19], %22 {strides = array<i32>} : memref<1x8x16x128xf32, #tpu.memory_space<vmem>>, vector<1x1x16x128xf32>,
    %23 = vector.extract_strided_slice %10 {offsets = [48, 0], sizes = [16, 128], strides = [1, 1]} : vector<128x128xf32> to vector<16x128xf32>
    %c0_20 = arith.constant 0 : index
    %c3 = arith.constant 3 : index
    %c0_21 = arith.constant 0 : index
    %c0_22 = arith.constant 0 : index
    %24 = vector.load %arg6[%c0_20, %c3, %c0_21, %c0_22] : memref<1x8x16x128xf32, #tpu.memory_space<vmem>>, vector<1x1x16x128xf32>
    %25 = vector.shape_cast %24 : vector<1x1x16x128xf32> to vector<16x128xf32>
    %26 = vector.shape_cast %23 : vector<16x128xf32> to vector<1x1x16x128xf32>
    tpu.vector_store %arg6[%c0_20, %c3, %c0_21, %c0_22], %26 {strides = array<i32>} : memref<1x8x16x128xf32, #tpu.memory_space<vmem>>, vector<1x1x16x128xf32>,
    %27 = vector.extract_strided_slice %10 {offsets = [64, 0], sizes = [16, 128], strides = [1, 1]} : vector<128x128xf32> to vector<16x128xf32>
    %c0_23 = arith.constant 0 : index
    %c4 = arith.constant 4 : index
    %c0_24 = arith.constant 0 : index
    %c0_25 = arith.constant 0 : index
    %28 = vector.load %arg6[%c0_23, %c4, %c0_24, %c0_25] : memref<1x8x16x128xf32, #tpu.memory_space<vmem>>, vector<1x1x16x128xf32>
    %29 = vector.shape_cast %28 : vector<1x1x16x128xf32> to vector<16x128xf32>
    %30 = vector.shape_cast %27 : vector<16x128xf32> to vector<1x1x16x128xf32>
    tpu.vector_store %arg6[%c0_23, %c4, %c0_24, %c0_25], %30 {strides = array<i32>} : memref<1x8x16x128xf32, #tpu.memory_space<vmem>>, vector<1x1x16x128xf32>,
    %31 = vector.extract_strided_slice %10 {offsets = [80, 0], sizes = [16, 128], strides = [1, 1]} : vector<128x128xf32> to vector<16x128xf32>
    %c0_26 = arith.constant 0 : index
    %c5 = arith.constant 5 : index
    %c0_27 = arith.constant 0 : index
    %c0_28 = arith.constant 0 : index
    %32 = vector.load %arg6[%c0_26, %c5, %c0_27, %c0_28] : memref<1x8x16x128xf32, #tpu.memory_space<vmem>>, vector<1x1x16x128xf32>
    %33 = vector.shape_cast %32 : vector<1x1x16x128xf32> to vector<16x128xf32>
    %34 = vector.shape_cast %31 : vector<16x128xf32> to vector<1x1x16x128xf32>
    tpu.vector_store %arg6[%c0_26, %c5, %c0_27, %c0_28], %34 {strides = array<i32>} : memref<1x8x16x128xf32, #tpu.memory_space<vmem>>, vector<1x1x16x128xf32>,
    %35 = vector.extract_strided_slice %10 {offsets = [96, 0], sizes = [16, 128], strides = [1, 1]} : vector<128x128xf32> to vector<16x128xf32>
    %c0_29 = arith.constant 0 : index
    %c6 = arith.constant 6 : index
    %c0_30 = arith.constant 0 : index
    %c0_31 = arith.constant 0 : index
    %36 = vector.load %arg6[%c0_29, %c6, %c0_30, %c0_31] : memref<1x8x16x128xf32, #tpu.memory_space<vmem>>, vector<1x1x16x128xf32>
    %37 = vector.shape_cast %36 : vector<1x1x16x128xf32> to vector<16x128xf32>
    %38 = vector.shape_cast %35 : vector<16x128xf32> to vector<1x1x16x128xf32>
    tpu.vector_store %arg6[%c0_29, %c6, %c0_30, %c0_31], %38 {strides = array<i32>} : memref<1x8x16x128xf32, #tpu.memory_space<vmem>>, vector<1x1x16x128xf32>,
    %39 = vector.extract_strided_slice %10 {offsets = [112, 0], sizes = [16, 128], strides = [1, 1]} : vector<128x128xf32> to vector<16x128xf32>
    %c0_32 = arith.constant 0 : index
    %c7 = arith.constant 7 : index
    %c0_33 = arith.constant 0 : index
    %c0_34 = arith.constant 0 : index
    %40 = vector.load %arg6[%c0_32, %c7, %c0_33, %c0_34] : memref<1x8x16x128xf32, #tpu.memory_space<vmem>>, vector<1x1x16x128xf32>
    %41 = vector.shape_cast %40 : vector<1x1x16x128xf32> to vector<16x128xf32>
    %42 = vector.shape_cast %39 : vector<16x128xf32> to vector<1x1x16x128xf32>
    tpu.vector_store %arg6[%c0_32, %c7, %c0_33, %c0_34], %42 {strides = array<i32>} : memref<1x8x16x128xf32, #tpu.memory_space<vmem>>, vector<1x1x16x128xf32>,
    return
  }
  func.func @transform_0(%arg0: i32, %arg1: i32) -> (i32, i32, i32) {
    %c0_i32 = arith.constant 0 : i32
    %c0_i32_0 = arith.constant 0 : i32
    return %arg0, %arg1, %c0_i32 : i32, i32, i32
  }
  func.func @transform_1(%arg0: i32, %arg1: i32) -> (i32, i32) {
    %c0_i32 = arith.constant 0 : i32
    %c0_i32_0 = arith.constant 0 : i32
    %c0_i32_1 = arith.constant 0 : i32
    return %c0_i32, %c0_i32_0 : i32, i32
  }
  func.func @transform_2(%arg0: i32, %arg1: i32) -> (i32, i32) {
    %c0_i32 = arith.constant 0 : i32
    %c0_i32_0 = arith.constant 0 : i32
    %c0_i32_1 = arith.constant 0 : i32
    return %c0_i32, %c0_i32_0 : i32, i32
  }
  func.func @transform_3(%arg0: i32, %arg1: i32) -> (i32, i32) {
    %c0_i32 = arith.constant 0 : i32
    %c0_i32_0 = arith.constant 0 : i32
    %c0_i32_1 = arith.constant 0 : i32
    return %c0_i32, %c0_i32_0 : i32, i32
  }
  func.func @transform_4(%arg0: i32, %arg1: i32) -> (i32, i32, i32, i32) {
    %c0_i32 = arith.constant 0 : i32
    %c0_i32_0 = arith.constant 0 : i32
    %c0_i32_1 = arith.constant 0 : i32
    return %arg0, %arg1, %c0_i32, %c0_i32_0 : i32, i32, i32, i32
  }
}

</mosaic_0001>

<bundles_post_ra>
// kernel: tpu_custom_call.1
= control target key start
LH: loop header
LB: loop body
LE: loop exit
PB: predicated region body
PF: predicated region fallthrough
CT: control target
= control target key end

     0   :  { %9 = vsyncpa [#allocation3], 0  ;;  %s1366_s0 = inlined_call_operand.vmem [shape: f32[2,64,128], index: 0, kind: input, shape index: {}]   ;;  %s1367_s1 = inlined_call_operand.hbm [shape: f32[128,128], index: 1, kind: input, shape index: {}]   ;;  %s1368_s2 = inlined_call_operand.vmem [shape: f32[1,128], index: 2, kind: input, shape index: {}]   ;;  %s1369_s3 = inlined_call_operand.vmem [shape: f32[128,32], index: 3, kind: input, shape index: {}]   ;;  %s1370_s4 = inlined_call_operand.hbm [shape: f32[2,16,16,128], index: 4, kind: output, shape index: {}]  }
   0x1   :  { %10 = vsyncpa [#allocation4], 0 }
   0x2   :  { %12 = vsyncpa [#allocation4 + $0x1], 0  ;;  %s1103_s15 = smov 0   ;;  %s1105_s16 = smov 0  }
   0x3   :  { %s1107_s17 = smov 0   ;;  %s1109_s18 = smov 0  }
   0x4   :  { %s1111_s19 = smov 0   ;;  %s1113_s20 = smov 0  }
   0x5   :  { %s1115_s21 = smov 0   ;;  %s1117_s22 = smov 0  }
   0x6 LB: > { %s702_s23 = sadd.s32 4294967295, %s1070_s22   ;;  %s703_s24 = sadd.s32 4294967294, %s1070_s22   ;;  %s1070_s22 = sphi %s1117_s22, %s18_s22   ;;  %s1066_s21 = sphi %s1115_s21, %s1382_s21   ;;  %s1062_s20 = sphi %s1113_s20, %s1381_s20   ;;  %s1058_s19 = sphi %s1111_s19, %s1380_s19   ;;  %s1054_s18 = sphi %s1109_s18, %s1379_s18   ;;  %s1050_s17 = sphi %s1107_s17, %s1378_s17   ;;  %s1046_s16 = sphi %s1105_s16, %s1377_s16   ;;  %s1042_s15 = sphi %s1103_s15, %s1376_s15  }
   0x7   : > { %s27_s25 = sadd.s32 1, %s1062_s20  ;;  %s30_s26 = sadd.s32 1, %s1066_s21 }
   0x8   : > { %p28_p0 = scmp.ge.s32.totalorder %s27_s25, 2  ;;  %s130_s27 = sadd.s32 1, %s1050_s17 }
   0x9   : > { %p140_p1 = scmp.ne.s32.totalorder %s1050_s17, %s1046_s16  ;;  %p141_p2 = scmp.eq.s32.totalorder %s702_s23, 3 }
   0xa   : > { %s1384_s25 = smov (%p28_p0, %s27_s25), 0  ;;  %s1386_s26 = smov (!%p28_p0, %s30_s26), %s1066_s21 }
   0xb   : > { %s126_s28 = ssub.s32 %s1062_s20, %s1384_s25  ;;  %p1155_p3 = por %p141_p2, %p140_p1 }
   0xc   : > { %p32_p4 = scmp.ge.s32.totalorder %s1386_s26, 2  ;;  %p146_p5 = scmp.ne.s32.totalorder %s1046_s16, %s1042_s15 }
   0xd   : > { %p147_p6 = scmp.eq.s32.totalorder %s703_s24, 3  ;;  %p704_p7 = scmp.ge.s32.totalorder %s1070_s22, 1 }
   0xe   : > { %s1388_s26 = smov (%p32_p4, %s1386_s26), 0  ;;  %p154_p9 = scmp.lt.s32.totalorder %s1070_s22, 5 }
   0xf   : > { %p1164_p8 = por %p147_p6, %p146_p5  ;;  %s125_s5 = ssub.s32 %s1066_s21, %s1388_s26 }
  0x10   : > { %s127_s6 = sor.u32 %s126_s28, %s125_s5  ;;  %p1171_p10 = pnand %p704_p7, %p154_p9 }
  0x11   : > { %p128_p11 = scmp.eq.s32.totalorder %s127_s6, 0  ;;  %p1175_p12 = scmp.eq.s32.totalorder %s702_s23, 0 }
  0x12   : > { %p868_p13 = pneg %p1171_p10  ;;  %s1072_s10 = smov [#allocation2]  }
  0x13   : > { %s1182_s9 = scalar_select %p128_p11, %s1050_s17, %s130_s27  }
  0x14   : > { %s166_s11 = sshll.u32 %s1072_s10, 4  ;;  %p1186_p0 = pnand %p1175_p12, %p868_p13  ;;  %s167_s11 = int_to_ptr.vmem [resolvable:$true] %s166_s11 }
  0x15   : > { %s959_s13 = scalar_lea.vmem %s167_s11, 2048  ;;  %p967_p6 = scmp.lt.s32.totalorder %s167_s11, %s167_s11 }
  0x16   : > { %p950_p1 = pneg %p1186_p0  ;;  %p960_p2 = scmp.ne.s32.totalorder %s167_s11, %s959_s13 }
  0x17   : > { %p968_p7 = scmp.lt.s32.totalorder %s959_s13, %s959_s13 }
  0x18   : > { %p962_p4 = pnand %p960_p2, %p950_p1 }
  0x19   : > { %p969_p9 = por %p968_p7, %p967_p6 }
  0x1a   : > { %p963_p5 = pneg %p962_p4 }
  0x1c   : > { %p970_p11 = pnand %p969_p9, %p963_p5 }
  0x1e   : > { %973 = shalt.err (!%p970_p11)
}
  0x1f   : > { %s1073_s14 = smov 128   ;;  %s1074_s23 = smov 8  }
  0x20   : > { %871 = dma.hbm_to_vmem [thread:$0]  (!%p1186_p0), %s1367_s1, 2048, %s167_s11, [#allocation3], %s1073_s14, %s1073_s14, %s1074_s23  }
  0x21   : > { %201 = sbr.rel (%p1171_p10) target bundleno = 518 (0x206), region = 36 }
  0x26   : > { %1033 = dma.done.wait (%p1175_p12), [#allocation3], 2048  }
  0x27   : > { %1035 = vsyncadd (%p1175_p12), [#allocation3], 4294965248  ;;  %s710_s28 = sshll.u32 %s1054_s18, 2  ;;  %p232_p13 = scmp.lt.s32.totalorder %s1058_s19, 1  ;;  %v261_v0 = vld [vmem:[#allocation2 + $0x78] sm:$0xff]  ;;  %v260_v1 = vld [vmem:[#allocation2 + $0x70] sm:$0xff] }
  0x28   : > { %p234_p1 = scmp.lt.s32.totalorder %s710_s28, 7  ;;  %792 = vmatprep.subr.mxu0 %v261_v0  ;;  %v259_v2 = vld [vmem:[#allocation2 + $0x68] sm:$0xff]  ;;  %v258_v3 = vld [vmem:[#allocation2 + $0x60] sm:$0xff]  ;;  %v257_v5 = vld [vmem:[#allocation2 + $0x58] sm:$0xff]  ;;  %vm374_vm0 = vcmask 261120   ;;  %s751_s12 = sshll.u32 %s1054_s18, 4 }
  0x29   : > { %s233_s5 = scalar_select %p232_p13, %s1058_s19, 1  ;;  %793 = vmatpush3.msra.mxu0 %v261_v0  ;;  %v256_v6 = vld [vmem:[#allocation2 + $0x50] sm:$0xff]  ;;  %v255_v7 = vld [vmem:[#allocation2 + $0x48] sm:$0xff]  ;;  %v254_v8 = vld [vmem:[#allocation2 + $0x40] sm:$0xff] }
  0x2a   : > { %s1390_s28 = smov (!%p234_p1, %s710_s28), 7  ;;  %794 = vmatprep.subr.mxu0 %v260_v1  ;;  %v253_v9 = vld [vmem:[#allocation2 + $0x38] sm:$0xff]  ;;  %v252_v10 = vld [vmem:[#allocation2 + $0x30] sm:$0xff]  ;;  %v251_v11 = vld [vmem:[#allocation2 + $0x28] sm:$0xff] }
  0x2b   : > { %s711_s6 = sshll.u32 %s233_s5, 3  ;;  %795 = vmatpush3.msra.mxu0 %v260_v1  ;;  %v250_v12 = vld [vmem:[#allocation2 + $0x20] sm:$0xff]  ;;  %v249_v13 = vld [vmem:[#allocation2 + $0x18] sm:$0xff]  ;;  %v248_v14 = vld [vmem:[#allocation2 + $0x10] sm:$0xff]  ;;  %s1075_s5 = smov [#allocation5]  }
  0x2c   : > { %s237_s10 = sadd.s32 %s711_s6, %s1390_s28  ;;  %796 = vmatprep.subr.mxu0 %v259_v2  ;;  %v247_v15 = vld [vmem:[#allocation2 + $0x8] sm:$0xff]  ;;  %v246_v16 = vld [vmem:[#allocation2] sm:$0xff]  ;;  %v360_v35 = vld [vmem:[%s1369_s3 + $0x10] sm:$0xff]  ;;  %s978_s6 = sshll.u32 %s1075_s5, 4  ;;  %s979_s6 = int_to_ptr.vmem [resolvable:$false] %s978_s6 }
  0x2d   : > { %s712_s11 = sshll.u32 %s237_s10, 3  ;;  %797 = vmatpush3.msra.mxu0 %v259_v2  ;;  %v358_v20 = vld [vmem:[%s1369_s3] sm:$0xff]  ;;  %v359_v34 = vld [vmem:[%s1369_s3 + $0x8] sm:$0xff]  ;;  %v361_v36 = vld [vmem:[%s1369_s3 + $0x18] sm:$0xff]  ;;  %s228_s10 = sand.u32 1, %s1046_s16  }
  0x2e   : > { %s1209_s8 = scalar_lea.vmem %s1366_s0, %s712_s11  ;;  %798 = vmatprep.subr.mxu0 %v258_v3  ;;  %838 = vmatprep.mubr.msk.f32.mxu1 %vm374_vm0, %v358_v20  ;;  %v713_v23 = vld [vmem:[%s1368_s2] ss:$0 sm:$0xff]  ;;  %v363_v38 = vld [vmem:[%s1369_s3 + $0x28] sm:$0xff]  ;;  %v364_v39 = vld [vmem:[%s1369_s3 + $0x30] sm:$0xff]  ;;  %s709_s11 = sshll.u32 %s228_s10, 7 }
  0x2f   : > { %v242_v4 = vld [vmem:[%s1209_s8] sm:$0xff]  ;;  %799 = vmatpush3.msra.mxu0 %v258_v3  ;;  %v243_v17 = vld [vmem:[%s1209_s8 + $0x8] sm:$0xff]  ;;  %v244_v18 = vld [vmem:[%s1209_s8 + $0x10] sm:$0xff]  ;;  %s1285_s7 = scalar_lea.vmem [#allocation5], %s709_s11  ;;  %s980_s11 = scalar_lea.vmem %s979_s6, 4096 }
  0x30   : > { %824 = vmatprep.mubr.f32.mxu0 %v242_v4  ;;  %800 = vmatprep.subr.mxu0 %v257_v5  ;;  %v245_v19 = vld [vmem:[%s1209_s8 + $0x18] sm:$0xff]  ;;  %v362_v37 = vld [vmem:[%s1369_s3 + $0x20] sm:$0xff]  ;;  %v367_v42 = vld [vmem:[%s1369_s3 + $0x48] sm:$0xff]  ;;  %s747_s8 = sshll.u32 %s1058_s19, 5  ;;  %s608_s23 = sshll.u32 %s1285_s7, 4  ;;  %s1309_s23 = int_to_ptr.vmem [resolvable:$true] %s608_s23 }
  0x31   : > { %801 = vmatpush3.msra.mxu0 %v257_v5  ;;  %v365_v40 = vld [vmem:[%s1369_s3 + $0x38] sm:$0xff]  ;;  %v366_v41 = vld [vmem:[%s1369_s3 + $0x40] sm:$0xff]  ;;  %v368_v43 = vld [vmem:[%s1369_s3 + $0x50] sm:$0xff]  ;;  %s605_s13 = sadd.s32 %s751_s12, %s747_s8  ;;  %s1315_s19 = scalar_lea.sflag [#allocation4], %s228_s10 }
  0x32   : > { %802 = vmatprep.subr.mxu0 %v256_v6  ;;  %v369_v44 = vld [vmem:[%s1369_s3 + $0x58] sm:$0xff]  ;;  %v370_v45 = vld [vmem:[%s1369_s3 + $0x60] sm:$0xff]  ;;  %v371_v46 = vld [vmem:[%s1369_s3 + $0x68] sm:$0xff]  ;;  %s748_s14 = sshll.u32 %s605_s13, 7  ;;  %s974_s28 = scalar_lea.vmem %s1309_s23, 2048 }
  0x33   : > { %803 = vmatpush3.msra.mxu0 %v256_v6  ;;  %v372_v47 = vld [vmem:[%s1369_s3 + $0x70] sm:$0xff]  ;;  %v373_v48 = vld [vmem:[%s1369_s3 + $0x78] sm:$0xff]  ;;  %s1307_s18 = scalar_lea.hbm %s1370_s4, %s748_s14  ;;  %p975_p10 = scmp.ne.s32.totalorder %s1309_s23, %s974_s28 }
  0x34   : > { %804 = vmatprep.subr.mxu0 %v255_v7  ;;  %p981_p2 = scmp.lt.s32.totalorder %s1309_s23, %s979_s6  ;;  %p982_p4 = scmp.lt.s32.totalorder %s980_s11, %s974_s28 }
  0x35   : > { %805 = vmatpush3.msra.mxu0 %v255_v7  ;;  %p976_p12 = pnand %p975_p10, %p1155_p3 }
  0x36   : > { %806 = vmatprep.subr.mxu0 %v254_v8  ;;  %p983_p5 = por %p982_p4, %p981_p2 }
  0x37   : > { %807 = vmatpush3.msra.mxu0 %v254_v8  ;;  %p977_p0 = pneg %p976_p12 }
  0x38   : > { %808 = vmatprep.subr.mxu0 %v253_v9 }
  0x39   : > { %809 = vmatpush3.msra.mxu0 %v253_v9  ;;  %p984_p6 = pnand %p983_p5, %p977_p0 }
  0x3a   : > { %810 = vmatprep.subr.mxu0 %v252_v10 }
  0x3b   : > { %811 = vmatpush3.msra.mxu0 %v252_v10 }
  0x3c   : > { %812 = vmatprep.subr.mxu0 %v251_v11 }
  0x3d   : > { %813 = vmatpush3.msra.mxu0 %v251_v11 }
  0x3e   : > { %814 = vmatprep.subr.mxu0 %v250_v12 }
  0x3f   : > { %815 = vmatpush3.msra.mxu0 %v250_v12 }
  0x40   : > { %816 = vmatprep.subr.mxu0 %v249_v13 }
  0x41   : > { %817 = vmatpush3.msra.mxu0 %v249_v13 }
  0x42   : > { %818 = vmatprep.subr.mxu0 %v248_v14 }
  0x43   : > { %819 = vmatpush3.msra.mxu0 %v248_v14 }
  0x44   : > { %820 = vmatprep.subr.mxu0 %v247_v15 }
  0x45   : > { %821 = vmatpush3.msra.mxu0 %v247_v15 }
  0x46   : > { %822 = vmatprep.subr.mxu0 %v246_v16 }
  0x47   : > { %823 = vmatpush3.msra.mxu0 %v246_v16 }
  0x48   : > { %825 = vmatmul.mubr.f32.vlgmr.msra.gmra.mxu0 %v243_v17 }
  0x49   : > { %827 = vmatprep.mubr.f32.mxu0 %v244_v18 }
  0x4c   : > { %828 = vmatmul.mubr.f32.gmra.mxu0 %v245_v19 }
 0x108   : > { %v826_v21 = vpop.f32.mrf.mxu0 }
 0x109   : > { %v341_v27 = vadd.f32 %v826_v21, %v713_v23 }
 0x10a   : > { %v335_v22 = vpop.f32.mrf.mxu0 }
 0x10b   : > { %v336_v30 = vadd.f32 %v713_v23, %v335_v22  ;;  %v355_v32 = vmax.f32 %v341_v27, 0.0 }
 0x10c   : > { %v829_v24 = vpop.f32.mrf.mxu0 }
 0x10d   : > { %v351_v25 = vadd.f32 %v829_v24, %v713_v23  ;;  %v354_v33 = vmax.f32 %v336_v30, 0.0 }
 0x10e   : > { %v345_v26 = vpop.f32.mrf.mxu0 }
 0x10f   : > { %v357_v28 = vmax.f32 %v351_v25, 0.0  ;;  %v346_v29 = vadd.f32 %v713_v23, %v345_v26 }
 0x111   : > { %v356_v31 = vmax.f32 %v346_v29, 0.0  ;;  %830 = vmatprep.subr.mxu1 %v357_v28 }
 0x112   : > { %831 = vmatpush3.msra.mxu1 %v357_v28 }
 0x113   : > { %832 = vmatprep.subr.mxu1 %v356_v31 }
 0x114   : > { %833 = vmatpush3.msra.mxu1 %v356_v31 }
 0x115   : > { %834 = vmatprep.subr.mxu1 %v355_v32 }
 0x116   : > { %835 = vmatpush3.msra.mxu1 %v355_v32 }
 0x117   : > { %836 = vmatprep.subr.mxu1 %v354_v33 }
 0x118   : > { %837 = vmatpush3.msra.mxu1 %v354_v33 }
 0x119   : > { %839 = vmatmul.mubr.msk.f32.vlgmr.msra.gmra.mxu1 %vm374_vm0, %v359_v34 }
 0x11a   : > { %841 = vmatprep.mubr.msk.f32.mxu1 %vm374_vm0, %v360_v35 }
 0x11d   : > { %842 = vmatmul.mubr.msk.f32.gmra.mxu1 %vm374_vm0, %v361_v36 }
 0x11e   : > { %844 = vmatprep.mubr.msk.f32.mxu1 %vm374_vm0, %v362_v37 }
 0x121   : > { %845 = vmatmul.mubr.msk.f32.gmra.mxu1 %vm374_vm0, %v363_v38 }
 0x122   : > { %847 = vmatprep.mubr.msk.f32.mxu1 %vm374_vm0, %v364_v39 }
 0x125   : > { %848 = vmatmul.mubr.msk.f32.gmra.mxu1 %vm374_vm0, %v365_v40 }
 0x126   : > { %850 = vmatprep.mubr.msk.f32.mxu1 %vm374_vm0, %v366_v41 }
 0x129   : > { %851 = vmatmul.mubr.msk.f32.gmra.mxu1 %vm374_vm0, %v367_v42 }
 0x12a   : > { %853 = vmatprep.mubr.msk.f32.mxu1 %vm374_vm0, %v368_v43 }
 0x12d   : > { %854 = vmatmul.mubr.msk.f32.gmra.mxu1 %vm374_vm0, %v369_v44 }
 0x12e   : > { %856 = vmatprep.mubr.msk.f32.mxu1 %vm374_vm0, %v370_v45 }
 0x131   : > { %857 = vmatmul.mubr.msk.f32.gmra.mxu1 %vm374_vm0, %v371_v46 }
 0x132   : > { %859 = vmatprep.mubr.msk.f32.mxu1 %vm374_vm0, %v372_v47 }
 0x135   : > { %860 = vmatmul.mubr.msk.f32.gmra.mxu1 %vm374_vm0, %v373_v48 }
 0x1d9   : > { %v840_v49 = vpop.f32.mrf.mxu1 }
 0x1da   : > { %569 = vst [vmem:[%s1285_s7 + $0x8] sm:$0xff] %v840_v49 }
 0x1db   : > { %v489_v50 = vpop.f32.mrf.mxu1 }
 0x1dc   : > { %568 = vst [vmem:[%s1285_s7] sm:$0xff] %v489_v50 }
 0x1dd   : > { %v843_v51 = vpop.f32.mrf.mxu1 }
 0x1de   : > { %731 = vst [vmem:[%s1285_s7 + $0x18] sm:$0xff] %v843_v51 }
 0x1df   : > { %v499_v52 = vpop.f32.mrf.mxu1 }
 0x1e0   : > { %730 = vst [vmem:[%s1285_s7 + $0x10] sm:$0xff] %v499_v52 }
 0x1e1   : > { %v846_v53 = vpop.f32.mrf.mxu1 }
 0x1e2   : > { %733 = vst [vmem:[%s1285_s7 + $0x28] sm:$0xff] %v846_v53 }
 0x1e3   : > { %v509_v54 = vpop.f32.mrf.mxu1 }
 0x1e4   : > { %732 = vst [vmem:[%s1285_s7 + $0x20] sm:$0xff] %v509_v54 }
 0x1e5   : > { %v849_v55 = vpop.f32.mrf.mxu1 }
 0x1e6   : > { %735 = vst [vmem:[%s1285_s7 + $0x38] sm:$0xff] %v849_v55 }
 0x1e7   : > { %v519_v56 = vpop.f32.mrf.mxu1 }
 0x1e8   : > { %734 = vst [vmem:[%s1285_s7 + $0x30] sm:$0xff] %v519_v56 }
 0x1e9   : > { %v852_v57 = vpop.f32.mrf.mxu1 }
 0x1ea   : > { %737 = vst [vmem:[%s1285_s7 + $0x48] sm:$0xff] %v852_v57 }
 0x1eb   : > { %v529_v58 = vpop.f32.mrf.mxu1 }
 0x1ec   : > { %736 = vst [vmem:[%s1285_s7 + $0x40] sm:$0xff] %v529_v58 }
 0x1ed   : > { %v855_v59 = vpop.f32.mrf.mxu1 }
 0x1ee   : > { %739 = vst [vmem:[%s1285_s7 + $0x58] sm:$0xff] %v855_v59 }
 0x1ef   : > { %v539_v60 = vpop.f32.mrf.mxu1 }
 0x1f0   : > { %738 = vst [vmem:[%s1285_s7 + $0x50] sm:$0xff] %v539_v60 }
 0x1f1   : > { %v858_v61 = vpop.f32.mrf.mxu1 }
 0x1f2   : > { %741 = vst [vmem:[%s1285_s7 + $0x68] sm:$0xff] %v858_v61 }
 0x1f3   : > { %v549_v62 = vpop.f32.mrf.mxu1 }
 0x1f4   : > { %740 = vst [vmem:[%s1285_s7 + $0x60] sm:$0xff] %v549_v62 }
 0x1f5   : > { %v861_v63 = vpop.f32.mrf.mxu1 }
 0x1f6   : > { %743 = vst [vmem:[%s1285_s7 + $0x78] sm:$0xff] %v861_v63 }
 0x1f7   : > { %v559_v0 = vpop.f32.mrf.mxu1 }
 0x1f8   : > { %742 = vst [vmem:[%s1285_s7 + $0x70] sm:$0xff] %v559_v0 }
 0x1f9   : > { %987 = shalt.err (!%p984_p6)
}
 0x1fa   : > { %s988_s10 = scalar_lea.hbm %s1307_s18, 2048  ;;  %s992_s8 = scalar_lea.hbm %s1370_s4, 8192 }
 0x1fb   : > { %p989_p7 = scmp.ne.s32.totalorder %s1307_s18, %s988_s10  ;;  %p993_p13 = scmp.lt.s32.totalorder %s1307_s18, %s1370_s4 }
 0x1fc   : > { %p994_p1 = scmp.lt.s32.totalorder %s992_s8, %s988_s10 }
 0x1fd   : > { %p990_p9 = pnand %p989_p7, %p1155_p3 }
 0x1fe   : > { %p995_p10 = por %p994_p1, %p993_p13 }
 0x1ff   : > { %p991_p11 = pneg %p990_p9 }
 0x201   : > { %p996_p12 = pnand %p995_p10, %p991_p11 }
 0x203   : > { %999 = shalt.err (!%p996_p12)
}
 0x204   : > { %s1076_s24 = smov 128   ;;  %s1077_s27 = smov 8  }
 0x205   : > { %866 = dma.vmem_to_hbm [thread:$0]  (%p1155_p3), %s1309_s23, 2048, %s1307_s18, %s1315_s19, %s1076_s24, %s1076_s24, %s1077_s27  }
 0x206 PF: > { %p878_p0 = scmp.ge.s32.totalorder %s1070_s22, 2  ;;  %s623_s28 = sand.u32 1, %s1042_s15  }
 0x207   : > { %s624_s5 = scalar_lea.sflag [#allocation4], %s623_s28 }
 0x208   : > { %p873_p2 = pnand %p878_p0, %p1164_p8 }
 0x20a   : > { %p874_p4 = pneg %p873_p2 }
 0x20c   : > { %1037 = dma.done.wait (%p874_p4), %s624_s5, 2048  }
 0x20d   : > { %1039 = vsyncadd (%p874_p4), %s624_s5, 4294965248  ;;  %s18_s22 = sadd.s32 1, %s1070_s22   ;;  %s1376_s15 = smov %s1046_s16 }
 0x20e   : > { %p15_p5 = scmp.ge.s32.totalorder %s18_s22, 6   ;;  %s1377_s16 = smov %s1050_s17 }
 0x20f   : > { %s1378_s17 = smov %s1182_s9  ;;  %s1379_s18 = smov %s1062_s20 }
 0x210   : > { %s1380_s19 = smov %s1066_s21  ;;  %s1381_s20 = smov %s1384_s25 }
 0x211   : > { %s1382_s21 = smov %s1388_s26  ;;  %17 = sbr.rel (!%p15_p5) target bundleno = 6 (0x6), region = 83 }
 0x216   :  { %629 = vsyncpa [#allocation3], 1 }
 0x217   :  { %631 = vsyncpa [#allocation3 + $0x1], 1 }
 0x218   :  { %632 = vsyncpa [#allocation4], 1 }
 0x219   :  { %634 = vsyncpa [#allocation4 + $0x1], 1 }

</bundles_post_ra>
